<compile_context>
chip_gen: v7x
topology: tpu7x:2x2x1
jax: 0.10.0
libtpu: 0.0.40
codegen_flags: <defaults>
</compile_context>

<pallas_src>
import functools

import jax
import jax.numpy as jnp
from jax.experimental import pallas as pl
from jax.experimental.pallas import tpu as pltpu

IGNORE_INDEX = -100

# Per-tile partials are written as one full (1, 8, 128) f32 block so the
# block's last two dims are (8, 128)-aligned and the store is lane-dense.
# Only [i, 0, 0] (sum) and [i, 0, 1] (count) are read back.
_OUT_SUB, _OUT_LANE = 8, 128


def _ce_partial_kernel(logits_ref, labels_ref, out_ref, *, n_rows, tile_n):
    x = logits_ref[...]                                    # (tile_n, C) native dtype
    labels = labels_ref[...]                               # (tile_n, 1) int32

    # Row validity: ignore_index AND in-bounds (last grid block may be ragged).
    row = (pl.program_id(0) * tile_n
           + jax.lax.broadcasted_iota(jnp.int32, labels.shape, 0))
    valid = (labels != IGNORE_INDEX) & (row < n_rows)      # (tile_n, 1) bool

    # Numerically stable log-softmax along the class (lane) axis.
    # Max on the native tile; upcast is fused into the exp expression.
    m = jnp.max(x, axis=-1, keepdims=True)                 # (tile_n, 1) native
    m32 = m.astype(jnp.float32)
    ex = jnp.exp(x.astype(jnp.float32) - m32)              # (tile_n, C) f32
    lse = jnp.log(jnp.sum(ex, axis=-1, keepdims=True))     # (tile_n, 1) f32

    # Gather the label logit on the native tile (sum of exact zeros + value;
    # no f32 one-hot temporary).
    col = jax.lax.broadcasted_iota(jnp.int32, x.shape, 1)
    picked_native = jnp.sum(
        jnp.where(col == labels, x, jnp.zeros((), x.dtype)),
        axis=-1, keepdims=True)                            # (tile_n, 1) native
    picked = picked_native.astype(jnp.float32) - m32       # shifted label logit

    per_sample = lse - picked                              # -log softmax[label]

    # NOTE: jnp.where is a select — garbage/NaN in OOB rows cannot leak.
    # Do NOT restructure this masking into a multiply (NaN * 0 = NaN).
    tile_sum = jnp.sum(jnp.where(valid, per_sample, 0.0))        # f32 scalar
    tile_cnt = jnp.sum(valid.astype(jnp.float32))                # exact (<=1024)

    lane = jax.lax.broadcasted_iota(jnp.int32, out_ref.shape, 2)
    out_ref[...] = jnp.where(lane == 0, tile_sum,
                             jnp.where(lane == 1, tile_cnt, 0.0))


def _vmem_capacity_bytes():
    """Per-TensorCore VMEM capacity; conservative 64 MiB fallback."""
    try:
        cap = int(pltpu.get_tpu_info().vmem_capacity_bytes)
        if cap > 0:
            return cap
    except Exception:
        pass
    return 64 * 1024 * 1024


def _choose_tile_n(n, c, itemsize, budget, min_tiles):
    # Per-row VMEM: 2 double-buffered native-dtype input rows
    #             + ~3 f32-wide in-kernel temporaries (exp / iota / compares)
    #             + 2 labels buffers, each padded to 128 lanes of int32.
    per_row = c * (2 * itemsize + 3 * 4) + 2 * 128 * 4
    max_rows = max(8, budget // per_row)
    n_rounded = ((n + 7) // 8) * 8
    tile = min(1024, max_rows, n_rounded)
    if min_tiles > 1 and n > 8 * min_tiles:
        # Guarantee >= min_tiles grid steps so the "parallel" axis can shard
        # across both TensorCores on v7x.
        tile = min(tile, max(8, n // min_tiles))
    return max(8, (tile // 8) * 8)


def cross_entropy_loss(logits, labels):
    """logits: (N, C) float (f32 or bf16); labels: (N,) or (N, 1) int.

    Returns scalar f32 = sum(valid losses) / count(valid)  (PyTorch 'mean').
    """
    if labels.ndim == 2:
        labels = labels.squeeze(1)                 # mirrors the PyTorch forward()
    n, c = logits.shape
    labels2d = labels.astype(jnp.int32).reshape(n, 1)

    itemsize = jnp.dtype(logits.dtype).itemsize
    cap = _vmem_capacity_bytes()
    budget = (cap * 5) // 8                        # v7x: ~40 MiB, v5e/v6e: ~80 MiB
    vmem_limit = (cap * 3) // 4                    # v7x: ~48 MiB, v5e/v6e: ~96 MiB
    min_tiles = 4 if cap <= 64 * 1024 * 1024 else 1

    tile_n = _choose_tile_n(n, c, itemsize, budget, min_tiles)
    num_tiles = pl.cdiv(n, tile_n)

    cost = pl.CostEstimate(
        flops=5 * n * c,
        transcendentals=n * c,
        bytes_accessed=n * c * itemsize + n * 4
        + num_tiles * _OUT_SUB * _OUT_LANE * 4,
    )

    logits_spec = pl.BlockSpec((tile_n, c), lambda i: (i, 0))
    if tile_n * c * itemsize < (1 << 20) and num_tiles > 2:
        # Small per-tile block: 3-deep buffering hides DMA issue latency.
        try:
            logits_spec = pl.BlockSpec((tile_n, c), lambda i: (i, 0),
                                       pipeline_mode=pl.Buffered(3))
        except TypeError:
            pass  # older BlockSpec without pipeline_mode

    kernel = functools.partial(_ce_partial_kernel, n_rows=n, tile_n=tile_n)

    partials = pl.pallas_call(
        kernel,
        out_shape=jax.ShapeDtypeStruct((num_tiles, _OUT_SUB, _OUT_LANE),
                                       jnp.float32),
        grid=(num_tiles,),
        in_specs=[
            logits_spec,
            pl.BlockSpec((tile_n, 1), lambda i: (i, 0)),
        ],
        out_specs=pl.BlockSpec((1, _OUT_SUB, _OUT_LANE), lambda i: (i, 0, 0)),
        compiler_params=pltpu.CompilerParams(
            dimension_semantics=("parallel",),       # megacore-shardable on v7x
            vmem_limit_bytes=vmem_limit,
        ),
        cost_estimate=cost,
    )(logits, labels2d)

    total = jnp.sum(partials[:, 0, 0])                          # f32 sum of losses
    count = jnp.sum(partials[:, 0, 1].astype(jnp.int32))        # exact int32 count
    return total / count.astype(jnp.float32)


def _reference(logits, labels):
    logp = jax.nn.log_softmax(logits.astype(jnp.float32), axis=-1)
    valid = labels != IGNORE_INDEX
    safe = jnp.where(valid, labels, 0)
    per = -jnp.take_along_axis(logp, safe[:, None], axis=-1)[:, 0]
    return jnp.sum(jnp.where(valid, per, 0.0)) / jnp.sum(valid.astype(jnp.float32))


if __name__ == "__main__":
    key = jax.random.PRNGKey(0)
    k1, k2, k3, k4 = jax.random.split(key, 4)

    # Case 1: f32, module-example-style shapes, with ignore_index.
    N, C = 8, 32
    logits = jax.random.normal(k1, (N, C), dtype=jnp.float32)
    labels = jax.random.randint(k2, (N,), 0, C, dtype=jnp.int32)
    labels = labels.at[3].set(IGNORE_INDEX)
    loss = jax.block_until_ready(cross_entropy_loss(logits, labels))
    ref = _reference(logits, labels)
    assert jnp.allclose(loss, ref, rtol=1e-5, atol=1e-5), (loss, ref)

    # Case 2: non-multiple-of-8 rows (exercises the ragged last block / row
    # mask, no jnp.pad of logits) + (N, 1) labels.
    N2, C2 = 13, 40
    logits2 = jax.random.normal(k3, (N2, C2), dtype=jnp.float32)
    labels2 = jax.random.randint(k4, (N2,), 0, C2, dtype=jnp.int32)
    labels2 = labels2.at[0].set(IGNORE_INDEX)
    loss2 = jax.block_until_ready(cross_entropy_loss(logits2, labels2[:, None]))
    ref2 = _reference(logits2, labels2)
    assert jnp.allclose(loss2, ref2, rtol=1e-5, atol=1e-5), (loss2, ref2)

    # Case 3: bf16 logits fed directly (no wrapper upcast, no whole-tile f32
    # copy inside the kernel).
    logits3 = logits.astype(jnp.bfloat16)
    loss3 = jax.block_until_ready(cross_entropy_loss(logits3, labels))
    ref3 = _reference(logits3, labels)
    assert jnp.allclose(loss3, ref3, rtol=1e-3, atol=1e-3), (loss3, ref3)

    print("KERNEL_OK")
</pallas_src>

<mosaic_0001>
module attributes {stable_mosaic.version = 11 : i64} {
  func.func @_ce_partial_kernel(%arg0: i32, %arg1: memref<8x32xf32, #tpu.memory_space<vmem>>, %arg2: memref<8x1xi32, #tpu.memory_space<vmem>>, %arg3: memref<1x8x128xf32, #tpu.memory_space<vmem>>) attributes {dimension_semantics = [#tpu.dimension_semantics<parallel>], iteration_bounds = array<i64: 1>, scalar_prefetch = 0 : i64, scratch_operands = 0 : i64, tpu.core_type = #tpu.core_type<tc>, window_params = [{transform_indices = @transform_0, window_bounds = array<i64: 8, 32>}, {transform_indices = @transform_1, window_bounds = array<i64: 8, 1>}, {transform_indices = @transform_2, window_bounds = array<i64: 1, 8, 128>}]} {
    %c0 = arith.constant 0 : index
    %c0_0 = arith.constant 0 : index
    %0 = vector.load %arg1[%c0, %c0_0] : memref<8x32xf32, #tpu.memory_space<vmem>>, vector<8x32xf32>
    %c0_1 = arith.constant 0 : index
    %c0_2 = arith.constant 0 : index
    %1 = vector.load %arg2[%c0_1, %c0_2] : memref<8x1xi32, #tpu.memory_space<vmem>>, vector<8x1xi32>
    %c8_i32 = arith.constant 8 : i32
    %2 = arith.muli %arg0, %c8_i32 : i32
    %3 = tpu.iota {dimensions = array<i32: 0>} : vector<8x1xi32>
    %4 = vector.broadcast %2 : i32 to vector<8x1xi32>
    %5 = arith.addi %4, %3 : vector<8x1xi32>
    %c-100_i32 = arith.constant -100 : i32
    %6 = vector.broadcast %c-100_i32 : i32 to vector<8x1xi32>
    %7 = arith.cmpi ne, %1, %6 : vector<8x1xi32>
    %c8_i32_3 = arith.constant 8 : i32
    %8 = vector.broadcast %c8_i32_3 : i32 to vector<8x1xi32>
    %9 = arith.cmpi slt, %5, %8 : vector<8x1xi32>
    %10 = arith.andi %7, %9 : vector<8x1xi1>
    %cst = arith.constant dense<0xFF800000> : vector<8xf32>
    %11 = vector.multi_reduction <maximumf>, %0, %cst [1] : vector<8x32xf32> to vector<8xf32>
    %12 = vector.shape_cast %11 : vector<8xf32> to vector<8x1xf32>
    %13 = vector.broadcast %12 : vector<8x1xf32> to vector<8x32xf32>
    %14 = arith.subf %0, %13 : vector<8x32xf32>
    %15 = math.exp %14 : vector<8x32xf32>
    %cst_4 = arith.constant dense<0.000000e+00> : vector<8xf32>
    %16 = vector.multi_reduction <add>, %15, %cst_4 [1] : vector<8x32xf32> to vector<8xf32>
    %17 = vector.shape_cast %16 : vector<8xf32> to vector<8x1xf32>
    %18 = math.log %17 : vector<8x1xf32>
    %19 = tpu.iota {dimensions = array<i32: 1>} : vector<8x32xi32>
    %20 = vector.broadcast %1 : vector<8x1xi32> to vector<8x32xi32>
    %21 = arith.cmpi eq, %19, %20 : vector<8x32xi32>
    %cst_5 = arith.constant 0.000000e+00 : f32
    %22 = vector.broadcast %cst_5 : f32 to vector<8x32xf32>
    %23 = arith.select %21, %0, %22 : vector<8x32xi1>, vector<8x32xf32>
    %cst_6 = arith.constant dense<0.000000e+00> : vector<8xf32>
    %24 = vector.multi_reduction <add>, %23, %cst_6 [1] : vector<8x32xf32> to vector<8xf32>
    %25 = vector.shape_cast %24 : vector<8xf32> to vector<8x1xf32>
    %26 = arith.subf %25, %12 : vector<8x1xf32>
    %27 = arith.subf %18, %26 : vector<8x1xf32>
    %cst_7 = arith.constant 0.000000e+00 : f32
    %28 = vector.broadcast %cst_7 : f32 to vector<8x1xf32>
    %29 = arith.select %10, %27, %28 : vector<8x1xi1>, vector<8x1xf32>
    %30 = vector.shape_cast %29 : vector<8x1xf32> to vector<1x8x1xf32>
    %cst_8 = arith.constant dense<0.000000e+00> : vector<1xf32>
    %31 = vector.multi_reduction <add>, %30, %cst_8 [1, 2] : vector<1x8x1xf32> to vector<1xf32>
    %32 = vector.shape_cast %31 : vector<1xf32> to vector<1x1x1xf32>
    %33 = vector.extract %32[0, 0, 0] : f32 from vector<1x1x1xf32>
    %34 = arith.extui %10 : vector<8x1xi1> to vector<8x1xi32>
    %35 = arith.sitofp %34 : vector<8x1xi32> to vector<8x1xf32>
    %36 = vector.shape_cast %35 : vector<8x1xf32> to vector<1x8x1xf32>
    %cst_9 = arith.constant dense<0.000000e+00> : vector<1xf32>
    %37 = vector.multi_reduction <add>, %36, %cst_9 [1, 2] : vector<1x8x1xf32> to vector<1xf32>
    %38 = vector.shape_cast %37 : vector<1xf32> to vector<1x1x1xf32>
    %39 = vector.extract %38[0, 0, 0] : f32 from vector<1x1x1xf32>
    %40 = tpu.iota {dimensions = array<i32: 2>} : vector<1x8x128xi32>
    %c0_i32 = arith.constant 0 : i32
    %41 = vector.broadcast %c0_i32 : i32 to vector<1x8x128xi32>
    %42 = arith.cmpi eq, %40, %41 : vector<1x8x128xi32>
    %c1_i32 = arith.constant 1 : i32
    %43 = vector.broadcast %c1_i32 : i32 to vector<1x8x128xi32>
    %44 = arith.cmpi eq, %40, %43 : vector<1x8x128xi32>
    %cst_10 = arith.constant 0.000000e+00 : f32
    %45 = vector.broadcast %39 : f32 to vector<1x8x128xf32>
    %46 = vector.broadcast %cst_10 : f32 to vector<1x8x128xf32>
    %47 = arith.select %44, %45, %46 : vector<1x8x128xi1>, vector<1x8x128xf32>
    %48 = vector.broadcast %33 : f32 to vector<1x8x128xf32>
    %49 = arith.select %42, %48, %47 : vector<1x8x128xi1>, vector<1x8x128xf32>
    %c0_11 = arith.constant 0 : index
    %c0_12 = arith.constant 0 : index
    %c0_13 = arith.constant 0 : index
    %50 = vector.load %arg3[%c0_11, %c0_12, %c0_13] : memref<1x8x128xf32, #tpu.memory_space<vmem>>, vector<1x8x128xf32>
    tpu.vector_store %arg3[%c0_11, %c0_12, %c0_13], %49 {strides = array<i32>} : memref<1x8x128xf32, #tpu.memory_space<vmem>>, vector<1x8x128xf32>,
    return
  }
  func.func @transform_0(%arg0: i32) -> (i32, i32) {
    %c0_i32 = arith.constant 0 : i32
    %c0_i32_0 = arith.constant 0 : i32
    return %arg0, %c0_i32 : i32, i32
  }
  func.func @transform_1(%arg0: i32) -> (i32, i32) {
    %c0_i32 = arith.constant 0 : i32
    %c0_i32_0 = arith.constant 0 : i32
    return %arg0, %c0_i32 : i32, i32
  }
  func.func @transform_2(%arg0: i32) -> (i32, i32, i32) {
    %c0_i32 = arith.constant 0 : i32
    %c0_i32_0 = arith.constant 0 : i32
    %c0_i32_1 = arith.constant 0 : i32
    return %arg0, %c0_i32, %c0_i32_0 : i32, i32, i32
  }
}

</mosaic_0001>

<bundles_post_ra>
// kernel: tpu_custom_call.1
= control target key start
LH: loop header
LB: loop body
LE: loop exit
PB: predicated region body
PF: predicated region fallthrough
CT: control target
= control target key end

     0   :  { %vm22_vm0 = vcmask 261120   ;;  %s167_s0 = inlined_call_operand.vmem [shape: f32[8,32], index: 0, kind: input, shape index: {}]   ;;  %s168_s1 = inlined_call_operand.vmem [shape: s32[8,1], index: 1, kind: input, shape index: {}]   ;;  %s169_s2 = inlined_call_operand.hbm [shape: f32[1,8,128], index: 2, kind: output, shape index: {}]  }
   0x1   :  { %v12_v0 = vld [vmem:[%s167_s0] sm:$0xff] }
   0x2   :  { %7 = vsyncpa [#allocation3], 0  ;;  %v23_v1 = vsel %vm22_vm0, %v12_v0, -inf  ;;  %v128_v2 = vmov 0   ;;  %v13_v3 = vld [vmem:[%s168_s1] sm:$0xff]  ;;  %v34_v7 = vlaneseq  ;;  %vm47_vm3 = vcmask 7168  }
   0x3   :  { %99 = vset.pattern.permute.xlu0 %v128_v2  ;;  %vm19_vm2 = vcmp.ne.s32.totalorder %v13_v3, 4294967196  ;;  %v129_v21 = vmov 0.0   ;;  %s130_s1 = smov [#allocation2]  }
   0x4   :  { %24 = vmax.xlane.f32.xlu0 %v23_v1  ;;  %v35_v8 = vand.u32 127, %v34_v7  ;;  %v91_v22 = vsel %vm19_vm2, 1.0, %v129_v21  ;;  %s83_s13 = sshll.u32 %s130_s1, 4  ;;  %s84_s13 = int_to_ptr.vmem [resolvable:$true] %s83_s13 }
   0x5   :  { %v60_v24 = vsel %vm47_vm3, %v91_v22, 0.0  ;;  %s104_s15 = scalar_lea.vmem %s84_s13, 128  ;;  %p109_p1 = scmp.lt.s32.totalorder %s84_s13, %s84_s13 }
   0x6   :  { %vm71_vm4 = vcmp.eq.s32.totalorder %v35_v8, 1  ;;  %vm70_vm5 = vcmp.eq.s32.totalorder %v35_v8, 0  ;;  %p105_p0 = scmp.ne.s32.totalorder %s84_s13, %s104_s15  ;;  %p110_p2 = scmp.lt.s32.totalorder %s104_s15, %s104_s15 }
   0x8   :  { %p111_p3 = por %p110_p2, %p109_p1 }
   0xa   :  { %p112_p4 = pnand %p111_p3, %p105_p0 }
  0x1a   :  { %37 = vperm.xlu0 %99, %v13_v3  }
  0x91   :  { %v25_v4 = vpop.xlane.xlu0 %24 }
  0x92   :  { %v26_v5 = vsub.f32 %v12_v0, %v25_v4 }
  0x94   :  { %v27_v6 = vmul.f32 1.442695, %v26_v5 }
  0x96   :  { %100 = vpow2.f32 %v27_v6 }
  0x99   :  { %v38_v9 = vpop.permute.xlu0 %37 }
  0x9a   :  { %vm39_vm1 = vcmp.eq.s32.totalorder %v35_v8, %v38_v9 }
  0x9b   :  { %v40_v11 = vsel %vm39_vm1, %v12_v0, 0.0 }
  0x9c   :  { %v41_v13 = vsel %vm22_vm0, %v40_v11, 0.0 }
  0xa0   :  { %v101_v10 = vpop.eup %100 }
  0xa1   :  { %v29_v12 = vsel %vm22_vm0, %v101_v10, 0.0 }
  0xa2   :  { %30 = vadd.xlane.f32.xlu1 %v29_v12 }
  0xa6   :  { %42 = vadd.xlane.f32.xlu1 %v41_v13 }
 0x12f   :  { %v31_v14 = vpop.xlane.xlu1 %30 }
 0x130   :  { %102 = vlog2.f32 %v31_v14 }
 0x133   :  { %v43_v15 = vpop.xlane.xlu1 %42 }
 0x134   :  { %v44_v18 = vsub.f32 %v43_v15, %v25_v4 }
 0x13a   :  { %v103_v16 = vpop.eup %102 }
 0x13b   :  { %v33_v17 = vmul.f32 0.6931472, %v103_v16 }
 0x13d   :  { %v45_v19 = vsub.f32 %v33_v17, %v44_v18 }
 0x13f   :  { %v46_v20 = vsel %vm19_vm2, %v45_v19, 0.0 }
 0x140   :  { %v48_v23 = vsel %vm47_vm3, %v46_v20, 0.0 }
 0x141   :  { %49 = vadd.xlane.f32.xlu1 %v48_v23 }
 0x145   :  { %61 = vadd.xlane.f32.xlu1 %v60_v24 }
 0x1ce   :  { %v50_v25 = vpop.xlane.xlu1 %49 }
 0x1cf   :  { %v51_v26 = vrot.slane %v50_v25, 4 }
 0x1d1   :  { %v52_v27 = vadd.f32 %v51_v26, %v50_v25 }
 0x1d2   :  { %v62_v28 = vpop.xlane.xlu1 %61 }
 0x1d3   :  { %v53_v29 = vrot.slane %v52_v27, 2  ;;  %v63_v30 = vrot.slane %v62_v28, 4 }
 0x1d5   :  { %v64_v31 = vadd.f32 %v63_v30, %v62_v28  ;;  %v54_v32 = vadd.f32 %v53_v29, %v52_v27 }
 0x1d7   :  { %v65_v33 = vrot.slane %v64_v31, 2  ;;  %v55_v34 = vrot.slane %v54_v32, 1 }
 0x1d9   :  { %v66_v35 = vadd.f32 %v65_v33, %v64_v31  ;;  %v56_v36 = vadd.f32 %v55_v34, %v54_v32 }
 0x1db   :  { %92 = vpush %v56_v36  ;;  %v67_v37 = vrot.slane %v66_v35, 1 }
 0x1dd   :  { %v68_v38 = vadd.f32 %v67_v37, %v66_v35 }
 0x1df   :  { %94 = vpush %v68_v38 }
 0x20c   :  { %s93_s0 = spop %92 }
 0x20d   :  { %v74_v40 = vstv %s93_s0 }
 0x210   :  { %s95_s14 = spop %94 }
 0x211   :  { %v72_v39 = vstv %s95_s14 }
 0x212   :  { %v73_v41 = vsel %vm71_vm4, %v72_v39, 0.0 }
 0x213   :  { %v75_v42 = vsel %vm70_vm5, %v74_v40, %v73_v41 }
 0x214   :  { %76 = vst [vmem:[#allocation2] sm:$0xff] %v75_v42 }
 0x215   :  { %115 = shalt.err (!%p112_p4)
}
 0x216   :  { %s116_s18 = scalar_lea.hbm %s169_s2, 128 }
 0x217   :  { %p117_p5 = scmp.ne.s32.totalorder %s169_s2, %s116_s18  ;;  %p120_p6 = scmp.lt.u32.totalorder %s116_s18, %s169_s2 }
 0x219   :  { %p122_p7 = pnand %p120_p6, %p117_p5 }
 0x21b   :  { %125 = shalt.err (!%p122_p7)
}
 0x21c   :  { %86 = dma.vmem_to_hbm [thread:$0]  %s84_s13, 128, %s169_s2, [#allocation3]  }
 0x21d   :  { %126 = dma.done.wait [#allocation3], 128  }
 0x21e   :  { %127 = vsyncadd [#allocation3], 4294967168 }
 0x21f   :  { %90 = vsyncpa [#allocation3], 1 }

</bundles_post_ra>
